<compile_context>
chip_gen: v5e
topology: v5e:2x2
jax: 0.10.0
libtpu: 0.0.40
codegen_flags: <defaults>
</compile_context>

<pallas_src>
import functools

import jax
import jax.numpy as jnp
from jax import lax
from jax.experimental import pallas as pl
from jax.experimental.pallas import tpu as pltpu

_LANE = 128
_SUBLANE = 8


def _round_up(n, m):
    return ((n + m - 1) // m) * m


def _vmem_limit_bytes():
    """~80% of per-core VMEM (128 MiB on v5e/v6e, 64 MiB on v7x); None -> default."""
    try:
        cap = int(pltpu.get_tpu_info().vmem_capacity_bytes)
        if cap >= (16 << 20):
            return int(cap * 0.8)
    except Exception:
        pass
    return None


def _proj_kernel(x_ref, wq_ref, wv_ref, q_ref, v_ref):
    """One row tile of the (pre-scaled) query and value projections."""
    x = x_ref[...]                                   # (tile, d_in_p) f32
    q_ref[...] = jnp.dot(x, wq_ref[...], preferred_element_type=jnp.float32)
    v_ref[...] = jnp.dot(x, wv_ref[...], preferred_element_type=jnp.float32)


def _attn_kernel(q_ref, v_ref, o_ref, m_sc, l_sc, acc_sc, *, seq, tile, padded):
    """Flash-style step: one (q-tile, kv-chunk) pair with online softmax."""
    j = pl.program_id(1)

    @pl.when(j == 0)
    def _():
        m_sc[...] = jnp.full_like(m_sc, -jnp.inf)
        l_sc[...] = jnp.zeros_like(l_sc)
        acc_sc[...] = jnp.zeros_like(acc_sc)

    q = q_ref[...]                      # (tile, d_out_p); scale folded into W_query
    v = v_ref[...]                      # (tile, d_out_p); zero rows beyond seq

    # attn_scores = queries @ values.T (faithful SelfAttention_v1 quirk).
    # dot_general contracts dim 1 of both operands -> no transposed copy of v.
    s = lax.dot_general(
        q, v,
        dimension_numbers=(((1,), (1,)), ((), ())),
        preferred_element_type=jnp.float32)          # (tile, tile)

    if padded:  # static branch: mask key columns that are row padding
        col = j * tile + lax.broadcasted_iota(jnp.int32, s.shape, 1)
        s = jnp.where(col < seq, s, jnp.float32(-1e30))

    m_prev = m_sc[...]
    m_new = jnp.maximum(m_prev, jnp.max(s, axis=-1, keepdims=True))
    alpha = jnp.exp(m_prev - m_new)
    p = jnp.exp(s - m_new)
    l_sc[...] = alpha * l_sc[...] + jnp.sum(p, axis=-1, keepdims=True)
    acc_sc[...] = alpha * acc_sc[...] + jnp.dot(
        p, v, preferred_element_type=jnp.float32)
    m_sc[...] = m_new

    @pl.when(j == pl.num_programs(1) - 1)
    def _():
        # Deferred normalization on the (tile, d_out) context, not the scores.
        # pl.reciprocal is kept exact (approx=True would trade accuracy for EUP).
        o_ref[...] = (acc_sc[...] * pl.reciprocal(l_sc[...])).astype(o_ref.dtype)


def self_attention_v1(x, w_query, w_key, w_value, *, tile_max=256):
    """SelfAttention_v1.forward(x) on TPU via Pallas.

    w_key is accepted only to mirror the module's parameters; its projection is
    dead code in the reference (only keys.shape[-1] == d_out feeds the softmax
    scale), so it is neither DMA'd nor multiplied.
    tile_max: cap on the q/kv row tile (v5e may prefer 128; default 256).
    """
    seq, d_in = x.shape
    d_out = w_query.shape[1]
    assert w_key.shape == (d_in, d_out) and w_value.shape == (d_in, d_out)

    f32 = jnp.float32
    d_in_p = _round_up(d_in, _LANE)
    d_out_p = _round_up(d_out, _LANE)

    # Balanced row tiles, rounded to the sublane (8): padding waste is bounded
    # by ~8 rows per tile instead of up to tile_max-1.
    seq8 = _round_up(seq, _SUBLANE)
    tile_max = max(_SUBLANE, _round_up(tile_max, _SUBLANE))
    n_tiles = -(-seq8 // tile_max)
    tile = _round_up(-(-seq8 // n_tiles), _SUBLANE)
    seq_p = n_tiles * tile

    scale = 1.0 / (float(w_key.shape[1]) ** 0.5)     # == 1/sqrt(d_out)

    xp = jnp.zeros((seq_p, d_in_p), f32).at[:seq, :d_in].set(x.astype(f32))
    # Fold the softmax scale into W_query while padding it (free in the wrapper).
    wqp = jnp.zeros((d_in_p, d_out_p), f32).at[:d_in, :d_out].set(
        w_query.astype(f32) * f32(scale))
    wvp = jnp.zeros((d_in_p, d_out_p), f32).at[:d_in, :d_out].set(
        w_value.astype(f32))

    vmem_limit = _vmem_limit_bytes()

    # ---- one-shot projections: pre-scaled Q and V, computed exactly once ----
    qp, vp = pl.pallas_call(
        _proj_kernel,
        out_shape=(jax.ShapeDtypeStruct((seq_p, d_out_p), f32),
                   jax.ShapeDtypeStruct((seq_p, d_out_p), f32)),
        grid_spec=pltpu.PrefetchScalarGridSpec(
            num_scalar_prefetch=0,
            grid=(n_tiles,),
            in_specs=[
                pl.BlockSpec((tile, d_in_p), lambda i: (i, 0)),      # x row tile
                pl.BlockSpec((d_in_p, d_out_p), lambda i: (0, 0)),   # W_query*scale
                pl.BlockSpec((d_in_p, d_out_p), lambda i: (0, 0)),   # W_value
            ],
            out_specs=[
                pl.BlockSpec((tile, d_out_p), lambda i: (i, 0)),     # Q
                pl.BlockSpec((tile, d_out_p), lambda i: (i, 0)),     # V
            ],
        ),
        compiler_params=pltpu.CompilerParams(
            dimension_semantics=("parallel",),
            vmem_limit_bytes=vmem_limit),
    )(xp, wqp, wvp)

    # ---- flash-style attention: grid = (q tiles "parallel", kv chunks "arbitrary") ----
    kernel = functools.partial(
        _attn_kernel, seq=seq, tile=tile, padded=(seq_p > seq))

    out_p = pl.pallas_call(
        kernel,
        out_shape=jax.ShapeDtypeStruct((seq_p, d_out_p), f32),
        grid_spec=pltpu.PrefetchScalarGridSpec(
            num_scalar_prefetch=0,
            grid=(n_tiles, n_tiles),
            in_specs=[
                pl.BlockSpec((tile, d_out_p), lambda i, j: (i, 0)),  # Q tile
                pl.BlockSpec((tile, d_out_p), lambda i, j: (j, 0)),  # V chunk
            ],
            out_specs=pl.BlockSpec((tile, d_out_p), lambda i, j: (i, 0)),
            scratch_shapes=[
                pltpu.VMEM((tile, 1), f32),          # running max m
                pltpu.VMEM((tile, 1), f32),          # running denominator l
                pltpu.VMEM((tile, d_out_p), f32),    # running context acc
            ],
        ),
        compiler_params=pltpu.CompilerParams(
            dimension_semantics=("parallel", "arbitrary"),
            vmem_limit_bytes=vmem_limit),
    )(qp, vp)

    return out_p[:seq, :d_out]


def self_attention_v1_ref(x, w_query, w_key, w_value):
    """Pure-JAX reference mirroring the PyTorch forward exactly (high precision)."""
    hp = lax.Precision.HIGHEST
    keys = jnp.dot(x, w_key, precision=hp)
    queries = jnp.dot(x, w_query, precision=hp)
    values = jnp.dot(x, w_value, precision=hp)
    attn_scores = jnp.dot(queries, values.T, precision=hp)   # faithful quirk
    attn_weights = jax.nn.softmax(attn_scores / keys.shape[-1] ** 0.5, axis=-1)
    return jnp.dot(attn_weights, values, precision=hp)


if __name__ == "__main__":
    # Case 1: the exact inputs from the reference script: (6, 3), d_out=2.
    x = jnp.array(
        [[0.43, 0.15, 0.89],
         [0.55, 0.87, 0.66],
         [0.57, 0.85, 0.64],
         [0.22, 0.58, 0.33],
         [0.77, 0.25, 0.10],
         [0.05, 0.80, 0.55]],
        dtype=jnp.float32,
    )
    d_in, d_out = x.shape[1], 2
    kq, kk, kv = jax.random.split(jax.random.PRNGKey(0), 3)
    w_query = jax.random.uniform(kq, (d_in, d_out), dtype=jnp.float32)
    w_key = jax.random.uniform(kk, (d_in, d_out), dtype=jnp.float32)
    w_value = jax.random.uniform(kv, (d_in, d_out), dtype=jnp.float32)

    out = jax.block_until_ready(self_attention_v1(x, w_query, w_key, w_value))
    ref = self_attention_v1_ref(x, w_query, w_key, w_value)
    assert out.shape == (x.shape[0], d_out)
    assert jnp.allclose(out, ref, atol=1e-5, rtol=1e-5)

    # Case 2: seq padding/masking + multi-tile grid + multi-chunk online softmax.
    seq2, d_in2, d_out2 = 37, 5, 7
    k2 = jax.random.split(jax.random.PRNGKey(0), 4)
    x2 = jax.random.uniform(k2[0], (seq2, d_in2), dtype=jnp.float32)
    wq2 = jax.random.uniform(k2[1], (d_in2, d_out2), dtype=jnp.float32)
    wk2 = jax.random.uniform(k2[2], (d_in2, d_out2), dtype=jnp.float32)
    wv2 = jax.random.uniform(k2[3], (d_in2, d_out2), dtype=jnp.float32)
    out2 = jax.block_until_ready(
        self_attention_v1(x2, wq2, wk2, wv2, tile_max=16))
    ref2 = self_attention_v1_ref(x2, wq2, wk2, wv2)
    assert out2.shape == (seq2, d_out2)
    assert jnp.allclose(out2, ref2, atol=1e-5, rtol=1e-5)

    # Case 3: longer sequence exercising balanced tiles with default tile_max.
    seq3, d_in3, d_out3 = 300, 8, 4
    k3 = jax.random.split(jax.random.PRNGKey(0), 4)
    x3 = jax.random.uniform(k3[0], (seq3, d_in3), dtype=jnp.float32)
    wq3 = jax.random.uniform(k3[1], (d_in3, d_out3), dtype=jnp.float32)
    wk3 = jax.random.uniform(k3[2], (d_in3, d_out3), dtype=jnp.float32)
    wv3 = jax.random.uniform(k3[3], (d_in3, d_out3), dtype=jnp.float32)
    out3 = jax.block_until_ready(self_attention_v1(x3, wq3, wk3, wv3))
    ref3 = self_attention_v1_ref(x3, wq3, wk3, wv3)
    assert out3.shape == (seq3, d_out3)
    assert jnp.allclose(out3, ref3, atol=1e-4, rtol=1e-4)

    print("KERNEL_OK")
</pallas_src>

<mosaic_0001>
module attributes {stable_mosaic.version = 11 : i64} {
  func.func @_proj_kernel(%arg0: i32, %arg1: memref<8x128xf32, #tpu.memory_space<vmem>>, %arg2: memref<128x128xf32, #tpu.memory_space<vmem>>, %arg3: memref<128x128xf32, #tpu.memory_space<vmem>>, %arg4: memref<8x128xf32, #tpu.memory_space<vmem>>, %arg5: memref<8x128xf32, #tpu.memory_space<vmem>>) attributes {dimension_semantics = [#tpu.dimension_semantics<parallel>], iteration_bounds = array<i64: 1>, scalar_prefetch = 0 : i64, scratch_operands = 0 : i64, tpu.core_type = #tpu.core_type<tc>, window_params = [{transform_indices = @transform_0, window_bounds = array<i64: 8, 128>}, {pipeline_mode = #tpu.pipeline_mode<synchronous>, transform_indices = @transform_1, window_bounds = array<i64: 128, 128>}, {pipeline_mode = #tpu.pipeline_mode<synchronous>, transform_indices = @transform_2, window_bounds = array<i64: 128, 128>}, {transform_indices = @transform_3, window_bounds = array<i64: 8, 128>}, {transform_indices = @transform_4, window_bounds = array<i64: 8, 128>}]} {
    %c0 = arith.constant 0 : index
    %c0_0 = arith.constant 0 : index
    %0 = vector.load %arg1[%c0, %c0_0] : memref<8x128xf32, #tpu.memory_space<vmem>>, vector<8x128xf32>
    %c0_1 = arith.constant 0 : index
    %c0_2 = arith.constant 0 : index
    %1 = vector.load %arg2[%c0_1, %c0_2] : memref<128x128xf32, #tpu.memory_space<vmem>>, vector<128x128xf32>
    %cst = arith.constant dense<0.000000e+00> : vector<8x128xf32>
    %2 = tpu.matmul %0, %1, %cst {dimension_numbers = #tpu.dot_dimension_numbers<[1], [0], [0], [1], [0, 0, 1, 1], [], []>} : vector<8x128xf32>, vector<128x128xf32>, vector<8x128xf32> -> vector<8x128xf32>
    %c0_3 = arith.constant 0 : index
    %c0_4 = arith.constant 0 : index
    %3 = vector.load %arg4[%c0_3, %c0_4] : memref<8x128xf32, #tpu.memory_space<vmem>>, vector<8x128xf32>
    tpu.vector_store %arg4[%c0_3, %c0_4], %2 {strides = array<i32>} : memref<8x128xf32, #tpu.memory_space<vmem>>, vector<8x128xf32>,
    %c0_5 = arith.constant 0 : index
    %c0_6 = arith.constant 0 : index
    %4 = vector.load %arg3[%c0_5, %c0_6] : memref<128x128xf32, #tpu.memory_space<vmem>>, vector<128x128xf32>
    %cst_7 = arith.constant dense<0.000000e+00> : vector<8x128xf32>
    %5 = tpu.matmul %0, %4, %cst_7 {dimension_numbers = #tpu.dot_dimension_numbers<[1], [0], [0], [1], [0, 0, 1, 1], [], []>} : vector<8x128xf32>, vector<128x128xf32>, vector<8x128xf32> -> vector<8x128xf32>
    %c0_8 = arith.constant 0 : index
    %c0_9 = arith.constant 0 : index
    %6 = vector.load %arg5[%c0_8, %c0_9] : memref<8x128xf32, #tpu.memory_space<vmem>>, vector<8x128xf32>
    tpu.vector_store %arg5[%c0_8, %c0_9], %5 {strides = array<i32>} : memref<8x128xf32, #tpu.memory_space<vmem>>, vector<8x128xf32>,
    return
  }
  func.func @transform_0(%arg0: i32) -> (i32, i32) {
    %c0_i32 = arith.constant 0 : i32
    %c0_i32_0 = arith.constant 0 : i32
    return %arg0, %c0_i32 : i32, i32
  }
  func.func @transform_1(%arg0: i32) -> (i32, i32) {
    %c0_i32 = arith.constant 0 : i32
    %c0_i32_0 = arith.constant 0 : i32
    %c0_i32_1 = arith.constant 0 : i32
    return %c0_i32, %c0_i32_0 : i32, i32
  }
  func.func @transform_2(%arg0: i32) -> (i32, i32) {
    %c0_i32 = arith.constant 0 : i32
    %c0_i32_0 = arith.constant 0 : i32
    %c0_i32_1 = arith.constant 0 : i32
    return %c0_i32, %c0_i32_0 : i32, i32
  }
  func.func @transform_3(%arg0: i32) -> (i32, i32) {
    %c0_i32 = arith.constant 0 : i32
    %c0_i32_0 = arith.constant 0 : i32
    return %arg0, %c0_i32 : i32, i32
  }
  func.func @transform_4(%arg0: i32) -> (i32, i32) {
    %c0_i32 = arith.constant 0 : i32
    %c0_i32_0 = arith.constant 0 : i32
    return %arg0, %c0_i32 : i32, i32
  }
}

</mosaic_0001>

<bundles_post_ra>
// kernel: tpu_custom_call.1
= control target key start
LH: loop header
LB: loop body
LE: loop exit
PB: predicated region body
PF: predicated region fallthrough
CT: control target
= control target key end

     0   :  { %10 = vsyncpa [#allocation3], 0  ;;  %s354_s0 = inlined_call_operand.hbm [shape: f32[8,128], index: 0, kind: input, shape index: {}]   ;;  %s355_s1 = inlined_call_operand.hbm [shape: f32[128,128], index: 1, kind: input, shape index: {}]   ;;  %s356_s2 = inlined_call_operand.hbm [shape: f32[128,128], index: 2, kind: input, shape index: {}]   ;;  %s357_s3 = inlined_call_operand.hbm [shape: f32[8,128], index: 3, kind: output, shape index: {0}]   ;;  %s358_s4 = inlined_call_operand.hbm [shape: f32[8,128], index: 4, kind: output, shape index: {1}]  }
   0x1   :  { %11 = vsyncpa [#allocation6], 0 }
   0x2   :  { %12 = vsyncpa [#allocation4], 0  ;;  %s29_s17 = sshll.u32 %s355_s1, 4  ;;  %s30_s17 = int_to_ptr.hbm [resolvable:$true] %s29_s17 }
   0x3   :  { %13 = vsyncpa [#allocation10], 0  ;;  %s307_s18 = smov [#allocation5]   ;;  %s19_s22 = sshll.u32 %s354_s0, 4  ;;  %s20_s22 = int_to_ptr.hbm [resolvable:$true] %s19_s22 }
   0x4   :  { %s31_s19 = sshll.u32 %s307_s18, 4  ;;  %s308_s23 = smov 128   ;;  %s32_s19 = int_to_ptr.vmem [resolvable:$true] %s31_s19 }
   0x5   :  { %s309_s24 = smov 8   ;;  %s310_s25 = smov [#allocation2]  }
   0x6   :  { %37 = dma.hbm_to_vmem [thread:$0]  %s30_s17, 2048, %s32_s19, [#allocation6], %s308_s23, %s308_s23, %s309_s24  }
   0x7   :  { %s21_s26 = sshll.u32 %s310_s25, 4  ;;  %s42_s29 = sshll.u32 %s356_s2, 4  ;;  %s22_s26 = int_to_ptr.vmem [resolvable:$true] %s21_s26  ;;  %s43_s29 = int_to_ptr.hbm [resolvable:$true] %s42_s29 }
   0x8   :  { %24 = dma.hbm_to_vmem [thread:$0]  %s20_s22, 128, %s22_s26, [#allocation3]  }
   0x9   :  { %s311_s1 = smov [#allocation7]  }
   0xa   :  { %s44_s30 = sshll.u32 %s311_s1, 4  ;;  %s45_s30 = int_to_ptr.vmem [resolvable:$true] %s44_s30 }
   0xb   :  { %50 = dma.hbm_to_vmem [thread:$0]  %s43_s29, 2048, %s45_s30, [#allocation6], %s308_s23, %s308_s23, %s309_s24  }
   0xc   :  { %299 = dma.done.wait [#allocation3], 128  }
   0xd   :  { %300 = vsyncadd [#allocation3], 4294967168 }
   0xe   :  { %301 = dma.done.wait [#allocation6], 4096  }
   0xf   :  { %302 = vsyncadd [#allocation6], 4294963200  ;;  %v79_v0 = vld [vmem:[#allocation5 + $0x78] sm:$0xff]  ;;  %v78_v2 = vld [vmem:[#allocation5 + $0x70] sm:$0xff]  ;;  %s312_s0 = smov [#allocation8]   ;;  %s145_s7 = sshll.u32 %s357_s3, 4  ;;  %s146_s7 = int_to_ptr.hbm [resolvable:$true] %s145_s7 }
  0x10   :  { %v116_v1 = vld [vmem:[#allocation7 + $0x78] sm:$0xff]  ;;  %80 = vmatpush.msra.mxu0 %v79_v0  ;;  %v115_v3 = vld [vmem:[#allocation7 + $0x70] sm:$0xff]  ;;  %v77_v4 = vld [vmem:[#allocation5 + $0x68] sm:$0xff]  ;;  %s143_s2 = sshll.u32 %s312_s0, 4  ;;  %s313_s8 = smov [#allocation9]   ;;  %s144_s2 = int_to_ptr.vmem [resolvable:$true] %s143_s2 }
  0x11   :  { %117 = vmatpush.msra.mxu1 %v116_v1  ;;  %v114_v5 = vld [vmem:[#allocation7 + $0x68] sm:$0xff]  ;;  %v76_v6 = vld [vmem:[#allocation5 + $0x60] sm:$0xff]  ;;  %v75_v8 = vld [vmem:[#allocation5 + $0x58] sm:$0xff]  ;;  %s154_s9 = sshll.u32 %s313_s8, 4  ;;  %s156_s12 = sshll.u32 %s358_s4, 4  ;;  %s155_s9 = int_to_ptr.vmem [resolvable:$true] %s154_s9  ;;  %s157_s12 = int_to_ptr.hbm [resolvable:$true] %s156_s12 }
  0x12   :  { %81 = vmatpush.msra.mxu0 %v78_v2  ;;  %v113_v7 = vld [vmem:[#allocation7 + $0x60] sm:$0xff]  ;;  %v112_v9 = vld [vmem:[#allocation7 + $0x58] sm:$0xff]  ;;  %v74_v10 = vld [vmem:[#allocation5 + $0x50] sm:$0xff] }
  0x13   :  { %118 = vmatpush.msra.mxu1 %v115_v3  ;;  %v111_v11 = vld [vmem:[#allocation7 + $0x50] sm:$0xff]  ;;  %v73_v12 = vld [vmem:[#allocation5 + $0x48] sm:$0xff]  ;;  %v72_v14 = vld [vmem:[#allocation5 + $0x40] sm:$0xff] }
  0x14   :  { %82 = vmatpush.msra.mxu0 %v77_v4  ;;  %v110_v13 = vld [vmem:[#allocation7 + $0x48] sm:$0xff]  ;;  %v109_v15 = vld [vmem:[#allocation7 + $0x40] sm:$0xff]  ;;  %v71_v16 = vld [vmem:[#allocation5 + $0x38] sm:$0xff] }
  0x15   :  { %119 = vmatpush.msra.mxu1 %v114_v5  ;;  %v108_v17 = vld [vmem:[#allocation7 + $0x38] sm:$0xff]  ;;  %v70_v18 = vld [vmem:[#allocation5 + $0x30] sm:$0xff]  ;;  %v69_v20 = vld [vmem:[#allocation5 + $0x28] sm:$0xff] }
  0x16   :  { %83 = vmatpush.msra.mxu0 %v76_v6  ;;  %v107_v19 = vld [vmem:[#allocation7 + $0x30] sm:$0xff]  ;;  %v106_v21 = vld [vmem:[#allocation7 + $0x28] sm:$0xff]  ;;  %v68_v22 = vld [vmem:[#allocation5 + $0x20] sm:$0xff] }
  0x17   :  { %120 = vmatpush.msra.mxu1 %v113_v7  ;;  %v105_v23 = vld [vmem:[#allocation7 + $0x20] sm:$0xff]  ;;  %v67_v24 = vld [vmem:[#allocation5 + $0x18] sm:$0xff]  ;;  %v66_v26 = vld [vmem:[#allocation5 + $0x10] sm:$0xff] }
  0x18   :  { %84 = vmatpush.msra.mxu0 %v75_v8  ;;  %v104_v25 = vld [vmem:[#allocation7 + $0x18] sm:$0xff]  ;;  %v103_v27 = vld [vmem:[#allocation7 + $0x10] sm:$0xff]  ;;  %v65_v28 = vld [vmem:[#allocation5 + $0x8] sm:$0xff] }
  0x19   :  { %121 = vmatpush.msra.mxu1 %v112_v9  ;;  %v102_v29 = vld [vmem:[#allocation7 + $0x8] sm:$0xff]  ;;  %v64_v30 = vld [vmem:[#allocation5] sm:$0xff]  ;;  %v63_v32 = vld [vmem:[#allocation2] sm:$0xff] }
  0x1a   :  { %85 = vmatpush.msra.mxu0 %v74_v10  ;;  %v101_v31 = vld [vmem:[#allocation7] sm:$0xff] }
  0x1b   :  { %122 = vmatpush.msra.mxu1 %v111_v11 }
  0x1c   :  { %86 = vmatpush.msra.mxu0 %v73_v12 }
  0x1d   :  { %123 = vmatpush.msra.mxu1 %v110_v13 }
  0x1e   :  { %87 = vmatpush.msra.mxu0 %v72_v14 }
  0x1f   :  { %124 = vmatpush.msra.mxu1 %v109_v15 }
  0x20   :  { %88 = vmatpush.msra.mxu0 %v71_v16 }
  0x21   :  { %125 = vmatpush.msra.mxu1 %v108_v17 }
  0x22   :  { %89 = vmatpush.msra.mxu0 %v70_v18 }
  0x23   :  { %126 = vmatpush.msra.mxu1 %v107_v19 }
  0x24   :  { %90 = vmatpush.msra.mxu0 %v69_v20 }
  0x25   :  { %127 = vmatpush.msra.mxu1 %v106_v21 }
  0x26   :  { %91 = vmatpush.msra.mxu0 %v68_v22 }
  0x27   :  { %128 = vmatpush.msra.mxu1 %v105_v23 }
  0x28   :  { %92 = vmatpush.msra.mxu0 %v67_v24 }
  0x29   :  { %129 = vmatpush.msra.mxu1 %v104_v25 }
  0x2a   :  { %93 = vmatpush.msra.mxu0 %v66_v26 }
  0x2b   :  { %130 = vmatpush.msra.mxu1 %v103_v27 }
  0x2c   :  { %94 = vmatpush.msra.mxu0 %v65_v28 }
  0x2d   :  { %131 = vmatpush.msra.mxu1 %v102_v29 }
  0x2e   :  { %95 = vmatpush.msra.mxu0 %v64_v30 }
  0x2f   :  { %132 = vmatpush.msra.mxu1 %v101_v31  ;;  %96 = vmatmul.f32.vlgmr.msra.gmra.mxu0 %v63_v32 }
  0x30   :  { %133 = vmatmul.f32.vlgmr.msra.gmra.mxu1 %v63_v32 }
  0xac   :  { %v97_v33 = vpop.f32.mrf.mxu0 }
  0xad   :  { %v134_v34 = vpop.f32.mrf.mxu1  ;;  %100 = vst [vmem:[#allocation8] sm:$0xff] %v97_v33 }
  0xae   :  { %137 = vst [vmem:[#allocation9] sm:$0xff] %v134_v34  ;;  %148 = dma.vmem_to_hbm [thread:$0]  %s144_s2, 128, %s146_s7, [#allocation4]  }
  0xaf   :  { %159 = dma.vmem_to_hbm [thread:$0]  %s155_s9, 128, %s157_s12, [#allocation10]  }
  0xb0   :  { %303 = dma.done.wait [#allocation4], 128  }
  0xb1   :  { %304 = vsyncadd [#allocation4], 4294967168 }
  0xb2   :  { %305 = dma.done.wait [#allocation10], 128  }
  0xb3   :  { %306 = vsyncadd [#allocation10], 4294967168 }
  0xb4   :  { %168 = vsyncpa [#allocation3], 1 }
  0xb5   :  { %169 = vsyncpa [#allocation6], 1 }
  0xb6   :  { %170 = vsyncpa [#allocation4], 1 }
  0xb7   :  { %171 = vsyncpa [#allocation10], 1 }

</bundles_post_ra>
